<compile_context>
chip_gen: v7x
topology: tpu7x:2x2x1
jax: 0.10.0
libtpu: 0.0.40
codegen_flags: <defaults>
</compile_context>

<pallas_src>
import jax
import jax.numpy as jnp
from jax import lax
from jax.experimental import pallas as pl
from jax.experimental.pallas import tpu as pltpu


def model_2layer_kernel(x_ref, w1t_ref, w2t_ref, prm_ref, o_ref):
    n1p = w1t_ref.shape[1]      # padded hidden width (multiple of 128)
    nout = w2t_ref.shape[1]     # 128 (lane-dense output slab; real cols 0..3)

    # ---- fc1 (no bias), NN-form: (B, N0) @ (N0, N1P) -> (B, N1P) on the MXU.
    h = jnp.dot(x_ref[...], w1t_ref[...],
                precision=lax.Precision.HIGHEST,
                preferred_element_type=jnp.float32)

    # ---- BatchNorm1d (training mode, eps=1e-5), fused one-pass statistics:
    #      a single axis-0 (cross-sublane / XLU) reduction over [h | h*h].
    inv_b = 1.0 / h.shape[0]                                   # static scalar
    s = jnp.sum(jnp.concatenate([h, h * h], axis=1),
                axis=0, keepdims=True) * inv_b                 # (1, 2*N1P)
    m = s[:, :n1p]
    var = jnp.maximum(s[:, n1p:] - m * m, 0.0)                 # clamp >= 0
    gamma = prm_ref[0:1, :]
    beta = prm_ref[1:2, :]
    scale = gamma * lax.rsqrt(var + 1e-5)                      # rsqrt -> EUP slot
    shift = beta - m * scale

    # ---- ReLU(bn) as one FMA + max per element.
    a = jnp.maximum(h * scale + shift, 0.0)

    # ---- fc2 (+ bias), NN-form: (B, N1P) @ (N1P, 128) -> (B, 128) on the MXU.
    z = jnp.dot(a, w2t_ref[...],
                precision=lax.Precision.HIGHEST,
                preferred_element_type=jnp.float32) + prm_ref[2:3, :nout]

    # ---- tanh, then F.normalize(p=2, dim=1, eps=1e-12):
    #      t / max(||t||, 1e-12) == t * rsqrt(max(sum t^2, 1e-24)), no divide.
    t = jnp.tanh(z)
    ss = jnp.sum(t * t, axis=1, keepdims=True)
    o_ref[...] = t * lax.rsqrt(jnp.maximum(ss, 1e-24))


def prepare_params(w1, gamma, beta, w2, b2):
    """One-time layout prep: pad to the 128-lane grain, transpose weights to
    NN-form, and pack (gamma, beta, b2) into a single (3, N1P) slab.
    Call once at parameter-init time; never in the per-forward path."""
    N1, N0 = w1.shape
    n1p = ((N1 + 127) // 128) * 128
    nout = 128
    w1t = jnp.zeros((N0, n1p), jnp.float32).at[:, :N1].set(
        jnp.asarray(w1, jnp.float32).T)                      # (N0, N1P)
    w2t = jnp.zeros((n1p, nout), jnp.float32).at[:N1, :4].set(
        jnp.asarray(w2, jnp.float32).T)                      # (N1P, 128)
    prm = (jnp.zeros((3, n1p), jnp.float32)
           .at[0, :N1].set(jnp.asarray(gamma, jnp.float32))  # row 0: gamma
           .at[1, :N1].set(jnp.asarray(beta, jnp.float32))   # row 1: beta
           .at[2, :4].set(jnp.asarray(b2, jnp.float32)))     # row 2: fc2 bias
    return w1t, w2t, prm


@jax.jit
def model_2layer_forward(x, w1t, w2t, prm):
    """x: (B, N0) f32. w1t/w2t/prm: pre-padded outputs of prepare_params."""
    B = x.shape[0]
    nout = w2t.shape[1]
    vmem = pl.BlockSpec(memory_space=pltpu.MemorySpace.VMEM)
    # Gridless: at this size the kernel is launch-overhead bound and the whole
    # problem (<100 KB) lives in VMEM; a single full-array invocation is
    # optimal. If B/N1 scale up, switch to (8,128)-multiple BlockSpec tiles
    # (BN stats then need a cross-tile reduction) and set vmem_limit_bytes.
    out = pl.pallas_call(
        model_2layer_kernel,
        out_shape=jax.ShapeDtypeStruct((B, nout), jnp.float32),
        in_specs=[vmem] * 4,
        out_specs=vmem,
    )(x, w1t, w2t, prm)
    # Lane-dense (B, 128) slab from the kernel; real outputs are cols 0..3.
    # The slice stays under the same jit so it fuses with the custom call.
    return out[:, :4]


def _reference(x, w1, gamma, beta, w2, b2):
    """Pure-JAX reference of the torch forward (training-mode BN)."""
    h = jnp.dot(x, w1.T, precision=lax.Precision.HIGHEST)
    m = jnp.mean(h, axis=0, keepdims=True)
    v = jnp.mean((h - m) ** 2, axis=0, keepdims=True)
    bn = gamma * (h - m) / jnp.sqrt(v + 1e-5) + beta
    a = jnp.maximum(bn, 0.0)
    z = jnp.dot(a, w2.T, precision=lax.Precision.HIGHEST) + b2
    t = jnp.tanh(z)
    n = jnp.sqrt(jnp.sum(t * t, axis=1, keepdims=True))
    return t / jnp.maximum(n, 1e-12)


if __name__ == "__main__":
    B, N0, N1 = 8, 32, 64

    key = jax.random.PRNGKey(0)
    kx, kw1, kw2, kb2 = jax.random.split(key, 4)

    x = jax.random.normal(kx, (B, N0), dtype=jnp.float32)
    # Deterministic parameter init (synthetic; shapes follow the torch module).
    w1 = jax.random.normal(kw1, (N1, N0), dtype=jnp.float32) * 0.1   # fc1.weight
    gamma = jnp.ones((N1,), dtype=jnp.float32)                       # bn1.weight
    beta = jnp.zeros((N1,), dtype=jnp.float32)                       # bn1.bias
    w2 = jax.random.normal(kw2, (4, N1), dtype=jnp.float32) * 0.1    # fc2.weight
    b2 = jax.random.normal(kb2, (4,), dtype=jnp.float32) * 0.1       # fc2.bias

    # One-time layout prep (amortized across all subsequent forward calls).
    w1t, w2t, prm = jax.block_until_ready(prepare_params(w1, gamma, beta, w2, b2))

    out = model_2layer_forward(x, w1t, w2t, prm)
    jax.block_until_ready(out)
    assert out.shape == (B, 4)

    ref = _reference(x, w1, gamma, beta, w2, b2)
    assert jnp.all(jnp.isfinite(out))
    err = float(jnp.max(jnp.abs(out - ref)))
    assert err < 1e-3, f"mismatch vs pure-JAX reference: {err}"

    print("KERNEL_OK")
</pallas_src>

<mosaic_0001>
module attributes {stable_mosaic.version = 11 : i64} {
  func.func @model_2layer_kernel(%arg0: memref<8x32xf32, #tpu.memory_space<vmem>>, %arg1: memref<32x128xf32, #tpu.memory_space<vmem>>, %arg2: memref<128x128xf32, #tpu.memory_space<vmem>>, %arg3: memref<3x128xf32, #tpu.memory_space<vmem>>, %arg4: memref<8x128xf32, #tpu.memory_space<vmem>>) attributes {dimension_semantics = [], scalar_prefetch = 0 : i64, scratch_operands = 0 : i64, tpu.core_type = #tpu.core_type<tc>} {
    %c0 = arith.constant 0 : index
    %c0_0 = arith.constant 0 : index
    %0 = vector.load %arg0[%c0, %c0_0] : memref<8x32xf32, #tpu.memory_space<vmem>>, vector<8x32xf32>
    %c0_1 = arith.constant 0 : index
    %c0_2 = arith.constant 0 : index
    %1 = vector.load %arg1[%c0_1, %c0_2] : memref<32x128xf32, #tpu.memory_space<vmem>>, vector<32x128xf32>
    %cst = arith.constant dense<0.000000e+00> : vector<8x128xf32>
    %2 = tpu.matmul %0, %1, %cst {dimension_numbers = #tpu.dot_dimension_numbers<[1], [0], [0], [1], [0, 0, 1, 1], [], []>, precision = #tpu.contract_precision<fp32>} : vector<8x32xf32>, vector<32x128xf32>, vector<8x128xf32> -> vector<8x128xf32>
    %3 = arith.mulf %2, %2 : vector<8x128xf32>
    %4 = tpu.concatenate %2, %3 in 1 : vector<8x128xf32>, vector<8x128xf32> -> vector<8x256xf32>
    %cst_3 = arith.constant dense<0.000000e+00> : vector<256xf32>
    %5 = vector.multi_reduction <add>, %4, %cst_3 [0] : vector<8x256xf32> to vector<256xf32>
    %6 = vector.shape_cast %5 : vector<256xf32> to vector<1x256xf32>
    %cst_4 = arith.constant 1.250000e-01 : f32
    %7 = vector.broadcast %cst_4 : f32 to vector<1x256xf32>
    %8 = arith.mulf %6, %7 : vector<1x256xf32>
    %9 = vector.extract_strided_slice %8 {offsets = [0, 0], sizes = [1, 128], strides = [1, 1]} : vector<1x256xf32> to vector<1x128xf32>
    %10 = vector.extract_strided_slice %8 {offsets = [0, 128], sizes = [1, 128], strides = [1, 1]} : vector<1x256xf32> to vector<1x128xf32>
    %11 = arith.mulf %9, %9 : vector<1x128xf32>
    %12 = arith.subf %10, %11 : vector<1x128xf32>
    %cst_5 = arith.constant 0.000000e+00 : f32
    %13 = vector.broadcast %cst_5 : f32 to vector<1x128xf32>
    %14 = arith.maximumf %12, %13 : vector<1x128xf32>
    %c0_6 = arith.constant 0 : index
    %c0_7 = arith.constant 0 : index
    %15 = vector.load %arg3[%c0_6, %c0_7] : memref<3x128xf32, #tpu.memory_space<vmem>>, vector<1x128xf32>
    %c1 = arith.constant 1 : index
    %c0_8 = arith.constant 0 : index
    %16 = vector.load %arg3[%c1, %c0_8] : memref<3x128xf32, #tpu.memory_space<vmem>>, vector<1x128xf32>
    %cst_9 = arith.constant 9.99999974E-6 : f32
    %17 = vector.broadcast %cst_9 : f32 to vector<1x128xf32>
    %18 = arith.addf %14, %17 : vector<1x128xf32>
    %19 = math.rsqrt %18 : vector<1x128xf32>
    %20 = arith.mulf %15, %19 : vector<1x128xf32>
    %21 = arith.mulf %9, %20 : vector<1x128xf32>
    %22 = arith.subf %16, %21 : vector<1x128xf32>
    %23 = vector.broadcast %20 : vector<1x128xf32> to vector<8x128xf32>
    %24 = arith.mulf %2, %23 : vector<8x128xf32>
    %25 = vector.broadcast %22 : vector<1x128xf32> to vector<8x128xf32>
    %26 = arith.addf %24, %25 : vector<8x128xf32>
    %cst_10 = arith.constant 0.000000e+00 : f32
    %27 = vector.broadcast %cst_10 : f32 to vector<8x128xf32>
    %28 = arith.maximumf %26, %27 : vector<8x128xf32>
    %c0_11 = arith.constant 0 : index
    %c0_12 = arith.constant 0 : index
    %29 = vector.load %arg2[%c0_11, %c0_12] : memref<128x128xf32, #tpu.memory_space<vmem>>, vector<128x128xf32>
    %cst_13 = arith.constant dense<0.000000e+00> : vector<8x128xf32>
    %30 = tpu.matmul %28, %29, %cst_13 {dimension_numbers = #tpu.dot_dimension_numbers<[1], [0], [0], [1], [0, 0, 1, 1], [], []>, precision = #tpu.contract_precision<fp32>} : vector<8x128xf32>, vector<128x128xf32>, vector<8x128xf32> -> vector<8x128xf32>
    %c2 = arith.constant 2 : index
    %c0_14 = arith.constant 0 : index
    %31 = vector.load %arg3[%c2, %c0_14] : memref<3x128xf32, #tpu.memory_space<vmem>>, vector<1x128xf32>
    %32 = vector.broadcast %31 : vector<1x128xf32> to vector<8x128xf32>
    %33 = arith.addf %30, %32 : vector<8x128xf32>
    %34 = math.tanh %33 : vector<8x128xf32>
    %35 = arith.mulf %34, %34 : vector<8x128xf32>
    %cst_15 = arith.constant dense<0.000000e+00> : vector<8xf32>
    %36 = vector.multi_reduction <add>, %35, %cst_15 [1] : vector<8x128xf32> to vector<8xf32>
    %37 = vector.shape_cast %36 : vector<8xf32> to vector<8x1xf32>
    %cst_16 = arith.constant 1.000000e-24 : f32
    %38 = vector.broadcast %cst_16 : f32 to vector<8x1xf32>
    %39 = arith.maximumf %37, %38 : vector<8x1xf32>
    %40 = math.rsqrt %39 : vector<8x1xf32>
    %41 = vector.broadcast %40 : vector<8x1xf32> to vector<8x128xf32>
    %42 = arith.mulf %34, %41 : vector<8x128xf32>
    %c0_17 = arith.constant 0 : index
    %c0_18 = arith.constant 0 : index
    %43 = vector.load %arg4[%c0_17, %c0_18] : memref<8x128xf32, #tpu.memory_space<vmem>>, vector<8x128xf32>
    tpu.vector_store %arg4[%c0_17, %c0_18], %42 {strides = array<i32>} : memref<8x128xf32, #tpu.memory_space<vmem>>, vector<8x128xf32>,
    return
  }
}

</mosaic_0001>

<bundles_post_ra>
// kernel: model_2layer_forward.1
= control target key start
LH: loop header
LB: loop body
LE: loop exit
PB: predicated region body
PF: predicated region fallthrough
CT: control target
= control target key end

     0   :  { %9 = vsyncpa [#allocation3], 0  ;;  %s2300_s0 = inlined_call_operand.hbm [shape: f32[8,32], index: 0, kind: input, shape index: {}]   ;;  %s2301_s1 = inlined_call_operand.hbm [shape: f32[32,128], index: 1, kind: input, shape index: {}]   ;;  %s2302_s2 = inlined_call_operand.hbm [shape: f32[128,128], index: 2, kind: input, shape index: {}]   ;;  %s2303_s3 = inlined_call_operand.vmem [shape: f32[3,128], index: 3, kind: input, shape index: {}]   ;;  %s2304_s4 = inlined_call_operand.vmem [shape: f32[8,128], index: 4, kind: output, shape index: {}]  }
   0x1   :  { %10 = vsyncpa [#allocation5], 0  ;;  %s1955_s15 = smov [#allocation4]   ;;  %s1885_s19 = scalar_lea.hbm %s2301_s1, 512 }
   0x2   :  { %s26_s16 = sshll.u32 %s1955_s15, 4  ;;  %p1886_p0 = scmp.ne.s32.totalorder %s2301_s1, %s1885_s19  ;;  %s27_s16 = int_to_ptr.vmem [resolvable:$true] %s26_s16 }
   0x3   :  { %p1889_p1 = scmp.lt.u32.totalorder %s1885_s19, %s2301_s1 }
   0x5   :  { %p1891_p2 = pnand %p1889_p1, %p1886_p0 }
   0x7   :  { %1894 = shalt.err (!%p1891_p2)
}
   0x8   :  { %s1895_s24 = scalar_lea.vmem %s27_s16, 512  ;;  %p1900_p4 = scmp.lt.s32.totalorder %s27_s16, %s27_s16 }
   0x9   :  { %p1896_p3 = scmp.ne.s32.totalorder %s27_s16, %s1895_s24  ;;  %p1901_p5 = scmp.lt.s32.totalorder %s1895_s24, %s1895_s24 }
   0xb   :  { %p1902_p6 = por %p1901_p5, %p1900_p4 }
   0xd   :  { %p1903_p7 = pnand %p1902_p6, %p1896_p3 }
   0xf   :  { %1906 = shalt.err (!%p1903_p7)
}
  0x10   :  { %s1956_s25 = smov 128   ;;  %s1957_s26 = smov 8  }
  0x11   :  { %32 = dma.hbm_to_vmem [thread:$0]  %s2301_s1, 512, %s27_s16, [#allocation5], %s1956_s25, %s1956_s25, %s1957_s26  }
  0x12   :  { %s1958_s29 = smov [#allocation2]   ;;  %s1959_s5 = smov [#allocation6]  }
  0x13   :  { %s17_s30 = sshll.u32 %s1958_s29, 4  ;;  %s38_s6 = sshll.u32 %s1959_s5, 4  ;;  %s18_s30 = int_to_ptr.vmem [resolvable:$true] %s17_s30  ;;  %s39_s6 = int_to_ptr.vmem [resolvable:$true] %s38_s6 }
  0x14   :  { %s1907_s9 = scalar_lea.hbm %s2300_s0, 128 }
  0x15   :  { %p1908_p8 = scmp.ne.s32.totalorder %s2300_s0, %s1907_s9  ;;  %p1911_p9 = scmp.lt.u32.totalorder %s1907_s9, %s2300_s0 }
  0x17   :  { %p1913_p10 = pnand %p1911_p9, %p1908_p8 }
  0x19   :  { %1916 = shalt.err (!%p1913_p10)
}
  0x1a   :  { %s1917_s1 = scalar_lea.vmem %s18_s30, 128  ;;  %p1922_p12 = scmp.lt.s32.totalorder %s18_s30, %s18_s30 }
  0x1b   :  { %p1918_p11 = scmp.ne.s32.totalorder %s18_s30, %s1917_s1  ;;  %p1923_p13 = scmp.lt.s32.totalorder %s1917_s1, %s1917_s1 }
  0x1d   :  { %p1924_p0 = por %p1923_p13, %p1922_p12 }
  0x1f   :  { %p1925_p1 = pnand %p1924_p0, %p1918_p11 }
  0x21   :  { %1928 = shalt.err (!%p1925_p1)
}
  0x22   :  { %20 = dma.hbm_to_vmem [thread:$0]  %s2300_s0, 128, %s18_s30, [#allocation3]  }
  0x23   :  { %s1929_s18 = scalar_lea.hbm %s2302_s2, 2048 }
  0x24   :  { %p1930_p2 = scmp.ne.s32.totalorder %s2302_s2, %s1929_s18  ;;  %p1933_p3 = scmp.lt.u32.totalorder %s1929_s18, %s2302_s2 }
  0x26   :  { %p1935_p4 = pnand %p1933_p3, %p1930_p2 }
  0x28   :  { %1938 = shalt.err (!%p1935_p4)
}
  0x29   :  { %s1939_s23 = scalar_lea.vmem %s39_s6, 2048  ;;  %p1944_p6 = scmp.lt.s32.totalorder %s39_s6, %s39_s6 }
  0x2a   :  { %p1940_p5 = scmp.ne.s32.totalorder %s39_s6, %s1939_s23  ;;  %p1945_p7 = scmp.lt.s32.totalorder %s1939_s23, %s1939_s23 }
  0x2c   :  { %p1946_p8 = por %p1945_p7, %p1944_p6 }
  0x2e   :  { %p1947_p9 = pnand %p1946_p8, %p1940_p5 }
  0x30   :  { %1950 = shalt.err (!%p1947_p9)
}
  0x31   :  { %44 = dma.hbm_to_vmem [thread:$0]  %s2302_s2, 2048, %s39_s6, [#allocation5], %s1956_s25, %s1956_s25, %s1957_s26  }
  0x32   :  { %1951 = dma.done.wait [#allocation3], 128  }
  0x33   :  { %1952 = vsyncadd [#allocation3], 4294967168 }
  0x34   :  { %1953 = dma.done.wait [#allocation5], 2560  }
  0x35   :  { %1954 = vsyncadd [#allocation5], 4294964736  ;;  %v1960_v0 = vmov 0.0|0.0   ;;  %vm1961_vm0 = vmmov 0   ;;  %v1962_v1 = vmov 0.0   ;;  %vm61_vm1 = vcmask 261120  }
  0x36   :  { %1671 = vmatprep.subr.bf16.mxu0 %v1960_v0  ;;  %1403 = vmatprep.mubr.msk.f32.mxu0 %vm1961_vm0, %v1962_v1  ;;  %v57_v2 = vld [vmem:[#allocation4] sm:$0xff]  ;;  %v58_v3 = vld [vmem:[#allocation4 + $0x8] sm:$0xff]  ;;  %v59_v4 = vld [vmem:[#allocation4 + $0x10] sm:$0xff] }
  0x37   :  { %1755 = vmatprep.subr.bf16.mxu1 %v1960_v0  ;;  %1563 = vmatprep.mubr.msk.f32.mxu1 %vm1961_vm0, %v1962_v1  ;;  %v66_v5 = vand.u32 4294901760, %v57_v2  ;;  %v69_v6 = vand.u32 4294901760, %v58_v3  ;;  %v60_v7 = vld [vmem:[#allocation4 + $0x18] sm:$0xff]  ;;  %v72_v8 = vand.u32 4294901760, %v59_v4  ;;  %v586_v41 = vld [vmem:[#allocation6] sm:$0xff]  ;;  %v587_v42 = vld [vmem:[#allocation6 + $0x8] sm:$0xff] }
  0x38   :  { %v56_v9 = vld [vmem:[#allocation2] sm:$0xff]  ;;  %v75_v10 = vand.u32 4294901760, %v60_v7  ;;  %v608_v43 = vand.u32 4294901760, %v586_v41  ;;  %v611_v44 = vand.u32 4294901760, %v587_v42  ;;  %v588_v47 = vld [vmem:[#allocation6 + $0x10] sm:$0xff]  ;;  %v590_v54 = vld [vmem:[#allocation6 + $0x20] sm:$0xff] }
  0x39   :  { %v63_v11 = vsel %vm61_vm1, %v56_v9, 0  ;;  %v1672_v12 = vpack.c.bf16 %v69_v6, %v66_v5  ;;  %v146_v13 = vsub.f32 %v57_v2, %v66_v5  ;;  %v153_v14 = vsub.f32 %v58_v3, %v69_v6  ;;  %v589_v48 = vld [vmem:[#allocation6 + $0x18] sm:$0xff]  ;;  %v591_v55 = vld [vmem:[#allocation6 + $0x28] sm:$0xff]  ;;  %v592_v62 = vld [vmem:[#allocation6 + $0x30] sm:$0xff] }
  0x3a   :  { %v160_v15 = vsub.f32 %v59_v4, %v72_v8  ;;  %v167_v16 = vsub.f32 %v60_v7, %v75_v10  ;;  %v134_v17 = vand.u32 4294901760, %v63_v11  ;;  %v1675_v18 = vpack.c.bf16 %v75_v10, %v72_v8  ;;  %v593_v63 = vld [vmem:[#allocation6 + $0x38] sm:$0xff]  ;;  %v594_v8 = vld [vmem:[#allocation6 + $0x40] sm:$0xff]  ;;  %v595_v9 = vld [vmem:[#allocation6 + $0x48] sm:$0xff] }
  0x3b   :  { %1673 = vmatpush3.bf16.msra.mxu0 %v1672_v12  ;;  %v147_v19 = vand.u32 4294901760, %v146_v13  ;;  %v154_v20 = vand.u32 4294901760, %v153_v14  ;;  %v1684_v37 = vpack.c.bf16 %v153_v14, %v146_v13  ;;  %v2060_v45 = vsub.f32 %v586_v41, %v608_v43 }
  0x3c   :  { %v161_v21 = vand.u32 4294901760, %v160_v15  ;;  %1674 = vmatprep.subr.bf16.mxu0 %v1960_v0  ;;  %v135_v22 = vsub.f32 %v63_v11, %v134_v17  ;;  %v168_v23 = vand.u32 4294901760, %v167_v16  ;;  %v1687_v38 = vpack.c.bf16 %v167_v16, %v160_v15 }
  0x3d   :  { %v148_v24 = vsub.f32 %v146_v13, %v147_v19  ;;  %v155_v25 = vsub.f32 %v153_v14, %v154_v20  ;;  %v1696_v39 = vpack.c.bf16 %v154_v20, %v147_v19  ;;  %v2062_v46 = vsub.f32 %v587_v42, %v611_v44 }
  0x3e   :  { %v162_v26 = vsub.f32 %v160_v15, %v161_v21  ;;  %v136_v27 = vand.u32 4294901760, %v135_v22  ;;  %v169_v28 = vsub.f32 %v167_v16, %v168_v23  ;;  %v1699_v40 = vpack.c.bf16 %v168_v23, %v161_v21  ;;  %v596_v16 = vld [vmem:[#allocation6 + $0x50] sm:$0xff] }
  0x3f   :  { %1676 = vmatpush3.bf16.msra.mxu0 %v1675_v18  ;;  %v149_v29 = vand.u32 4294901760, %v148_v24  ;;  %v156_v30 = vand.u32 4294901760, %v155_v25  ;;  %v1756_v49 = vpack.c.bf16 %v2062_v46, %v2060_v45  ;;  %v614_v50 = vand.u32 4294901760, %v588_v47  ;;  %v598_v24 = vld [vmem:[#allocation6 + $0x60] sm:$0xff]  ;;  %v599_v25 = vld [vmem:[#allocation6 + $0x68] sm:$0xff] }
  0x40   :  { %v137_v31 = vsub.f32 %v135_v22, %v136_v27  ;;  %1677 = vmatprep.subr.bf16.mxu0 %v1960_v0  ;;  %v163_v33 = vand.u32 4294901760, %v162_v26  ;;  %v170_v34 = vand.u32 4294901760, %v169_v28  ;;  %v617_v51 = vand.u32 4294901760, %v589_v48 }
  0x41   :  { %v1678_v32 = vpack.c.bf16 %v156_v30, %v149_v29  ;;  %1757 = vmatpush3.bf16.msra.mxu1 %v1756_v49  ;;  %v2066_v52 = vsub.f32 %v588_v47, %v614_v50  ;;  %v620_v57 = vand.u32 4294901760, %v590_v54  ;;  %v623_v58 = vand.u32 4294901760, %v591_v55 }
  0x42   :  { %v138_v35 = vand.u32 4294901760, %v137_v31  ;;  %v1681_v36 = vpack.c.bf16 %v170_v34, %v163_v33  ;;  %v2068_v53 = vsub.f32 %v589_v48, %v617_v51  ;;  %1758 = vmatprep.subr.bf16.mxu1 %v1960_v0  ;;  %v2073_v59 = vpack.c.bf16 %v611_v44, %v608_v43  ;;  %v600_v31 = vld [vmem:[#allocation6 + $0x70] sm:$0xff] }
  0x43   :  { %v2075_v60 = vsub.f32 %v590_v54, %v620_v57  ;;  %v2077_v61 = vsub.f32 %v591_v55, %v623_v58  ;;  %v626_v3 = vand.u32 4294901760, %v592_v62  ;;  %v629_v4 = vand.u32 4294901760, %v593_v63 }
  0x44   :  { %1404 = vmatmul.mubr.f32.vlgmr.msra.gmra.mrb[0].mxu0 %v138_v35  ;;  %v1759_v56 = vpack.c.bf16 %v2068_v53, %v2066_v52  ;;  %v2084_v5 = vpack.c.bf16 %v617_v51, %v614_v50  ;;  %v632_v11 = vand.u32 4294901760, %v594_v8  ;;  %v2095_v13 = vpack.c.bf16 %v623_v58, %v620_v57 }
  0x45   :  { %1679 = vmatpush3.bf16.msra.mxu0 %v1678_v32  ;;  %1414 = vmatprep.mubr.msk.f32.mxu0 %vm1961_vm0, %v1962_v1  ;;  %v1762_v2 = vpack.c.bf16 %v2077_v61, %v2075_v60  ;;  %v2086_v6 = vsub.f32 %v592_v62, %v626_v3  ;;  %v2088_v7 = vsub.f32 %v593_v63, %v629_v4  ;;  %v638_v19 = vand.u32 4294901760, %v596_v16  ;;  %v601_v32 = vld [vmem:[#allocation6 + $0x78] sm:$0xff] }
  0x46   :  { %1680 = vmatprep.subr.bf16.mxu0 %v1960_v0  ;;  %1760 = vmatpush3.bf16.msra.mxu1 %v1759_v56  ;;  %v2097_v14 = vsub.f32 %v594_v8, %v632_v11  ;;  %v2106_v21 = vpack.c.bf16 %v629_v4, %v626_v3  ;;  %v647_v28 = vand.u32 4294901760, %v599_v25  ;;  %v650_v34 = vand.u32 4294901760, %v600_v31 }
  0x47   :  { %1761 = vmatprep.subr.bf16.mxu1 %v1960_v0  ;;  %v1765_v10 = vpack.c.bf16 %v2088_v7, %v2086_v6  ;;  %v653_v35 = vand.u32 4294901760, %v601_v32  ;;  %v701_v42 = vand.u32 4294901760, %v2060_v45  ;;  %v708_v43 = vand.u32 4294901760, %v2062_v46 }
  0x48   :  { %v2122_v33 = vsub.f32 %v599_v25, %v647_v28  ;;  %v715_v51 = vand.u32 4294901760, %v2066_v52  ;;  %v722_v54 = vand.u32 4294901760, %v2068_v53  ;;  %v736_v62 = vand.u32 4294901760, %v2077_v61 }
  0x49   :  { %1682 = vmatpush3.bf16.msra.mxu0 %v1681_v36  ;;  %v2146_v44 = vpack.c.bf16 %v653_v35, %v650_v34  ;;  %v702_v47 = vsub.f32 %v2060_v45, %v701_v42  ;;  %v709_v48 = vsub.f32 %v2062_v46, %v708_v43  ;;  %v729_v46 = vand.u32 4294901760, %v2075_v60 }
  0x4a   :  { %1683 = vmatprep.subr.bf16.mxu0 %v1960_v0  ;;  %1763 = vmatpush3.bf16.msra.mxu1 %v1762_v2  ;;  %v716_v56 = vsub.f32 %v2066_v52, %v715_v51  ;;  %v723_v57 = vsub.f32 %v2068_v53, %v722_v54  ;;  %v737_v3 = vsub.f32 %v2077_v61, %v736_v62  ;;  %v750_v52 = vand.u32 4294901760, %v2088_v7 }
  0x4b   :  { %1764 = vmatprep.subr.bf16.mxu1 %v1960_v0  ;;  %v703_v49 = vand.u32 4294901760, %v702_v47  ;;  %v710_v50 = vand.u32 4294901760, %v709_v48  ;;  %v730_v2 = vsub.f32 %v2075_v60, %v729_v46 }
  0x4c   :  { %1415 = vmatmul.mubr.f32.vlgmr.msra.gmra.mrb[0].mxu0 %v134_v17  ;;  %v717_v58 = vand.u32 4294901760, %v716_v56  ;;  %v724_v45 = vand.u32 4294901760, %v723_v57  ;;  %v738_v8 = vand.u32 4294901760, %v737_v3 }
  0x4d   :  { %1685 = vmatpush3.bf16.msra.mxu0 %v1684_v37  ;;  %1425 = vmatprep.mubr.msk.f32.mxu0 %vm1961_vm0, %v1962_v1  ;;  %v2154_v55 = vpack.c.bf16 %v710_v50, %v703_v49  ;;  %v731_v4 = vand.u32 4294901760, %v730_v2  ;;  %v2194_v50 = vpack.c.bf16 %v708_v43, %v701_v42 }
  0x4e   :  { %1686 = vmatprep.subr.bf16.mxu0 %v1960_v0  ;;  %1766 = vmatpush3.bf16.msra.mxu1 %v1765_v10  ;;  %v2160_v63 = vpack.c.bf16 %v724_v45, %v717_v58 }
  0x4f   :  { %1767 = vmatprep.subr.bf16.mxu1 %v1960_v0  ;;  %v2166_v10 = vpack.c.bf16 %v738_v8, %v731_v4 }
  0x51   :  { %1688 = vmatpush3.bf16.msra.mxu0 %v1687_v38  ;;  %v2130_v38 = vsub.f32 %v600_v31, %v650_v34 }
  0x52   :  { %1689 = vmatprep.subr.bf16.mxu0 %v1960_v0 }
  0x53   :  { %v799_v47 = vand.u32 4294901760, %v2130_v38 }
  0x54   :  { %1426 = vmatmul.mubr.f32.vlgmr.msra.gmra.mrb[0].mxu0 %v135_v22  ;;  %v2108_v22 = vsub.f32 %v596_v16, %v638_v19 }
  0x55   :  { %1691 = vmatpush3.bf16.msra.mxu0 %v1672_v12  ;;  %1436 = vmatprep.mubr.msk.f32.mxu0 %vm1961_vm0, %v1962_v1 }
  0x56   :  { %1692 = vmatprep.subr.bf16.mxu0 %v1960_v0  ;;  %v771_v25 = vand.u32 4294901760, %v2108_v22 }
  0x59   :  { %1694 = vmatpush3.bf16.msra.mxu0 %v1675_v18 }
  0x5a   :  { %1695 = vmatprep.subr.bf16.mxu0 %v1960_v0 }
  0x5c   :  { %1437 = vmatmul.mubr.f32.vlgmr.msra.gmra.mrb[0].mxu0 %v136_v27  ;;  %v644_v27 = vand.u32 4294901760, %v598_v24 }
  0x5d   :  { %1697 = vmatpush3.bf16.msra.mxu0 %v1696_v39  ;;  %1447 = vmatprep.mubr.msk.f32.mxu0 %vm1961_vm0, %v1962_v1  ;;  %v2132_v39 = vsub.f32 %v601_v32, %v653_v35 }
  0x5e   :  { %1698 = vmatprep.subr.bf16.mxu0 %v1960_v0  ;;  %v2119_v30 = vsub.f32 %v598_v24, %v644_v27  ;;  %v2138_v41 = vpack.c.bf16 %v647_v28, %v644_v27 }
  0x60   :  { %v1774_v37 = vpack.c.bf16 %v2122_v33, %v2119_v30  ;;  %v785_v32 = vand.u32 4294901760, %v2119_v30 }
  0x61   :  { %1700 = vmatpush3.bf16.msra.mxu0 %v1699_v40  ;;  %v1777_v40 = vpack.c.bf16 %v2132_v39, %v2130_v38 }
  0x62   :  { %1701 = vmatprep.subr.bf16.mxu0 %v1960_v0 }
  0x64   :  { %1448 = vmatmul.mubr.f32.vlgmr.msra.gmra.mrb[0].mxu0 %v134_v17 }
  0x65   :  { %1703 = vmatpush3.bf16.msra.mxu0 %v1672_v12  ;;  %1458 = vmatprep.mubr.msk.f32.mxu0 %vm1961_vm0, %v1962_v1  ;;  %v635_v12 = vand.u32 4294901760, %v595_v9 }
  0x66   :  { %1704 = vmatprep.subr.bf16.mxu0 %v1960_v0 }
  0x67   :  { %v2099_v15 = vsub.f32 %v595_v9, %v635_v12  ;;  %v2117_v29 = vpack.c.bf16 %v635_v12, %v632_v11  ;;  %v743_v9 = vand.u32 4294901760, %v2086_v6  ;;  %v751_v11 = vsub.f32 %v2088_v7, %v750_v52 }
  0x68   :  { %v772_v7 = vsub.f32 %v2108_v22, %v771_v25 }
  0x69   :  { %1706 = vmatpush3.bf16.msra.mxu0 %v1675_v18  ;;  %v1768_v18 = vpack.c.bf16 %v2099_v15, %v2097_v14  ;;  %v744_v53 = vsub.f32 %v2086_v6, %v743_v9  ;;  %v752_v16 = vand.u32 4294901760, %v751_v11  ;;  %v764_v60 = vand.u32 4294901760, %v2099_v15 }
  0x6a   :  { %1707 = vmatprep.subr.bf16.mxu0 %v1960_v0  ;;  %v773_v28 = vand.u32 4294901760, %v772_v7  ;;  %v2202_v45 = vpack.c.bf16 %v750_v52, %v743_v9 }
  0x6b   :  { %1769 = vmatpush3.bf16.msra.mxu1 %v1768_v18  ;;  %v745_v12 = vand.u32 4294901760, %v744_v53 }
  0x6c   :  { %1459 = vmatmul.mubr.f32.vlgmr.msra.gmra.mrb[0].mxu0 %v134_v17  ;;  %v597_v17 = vld [vmem:[#allocation6 + $0x58] sm:$0xff]  ;;  %1770 = vmatprep.subr.bf16.mxu1 %v1960_v0 }
  0x6d   :  { %1493 = vmatprep.mubr.msk.f32.mxu0 %vm1961_vm0, %v1962_v1  ;;  %1709 = vmatpush3.bf16.msra.mxu0 %v2073_v59  ;;  %v641_v20 = vand.u32 4294901760, %v597_v17  ;;  %v2172_v18 = vpack.c.bf16 %v752_v16, %v745_v12 }
  0x6e   :  { %1710 = vmatprep.subr.bf16.mxu0 %v1960_v0 }
  0x6f   :  { %v2110_v23 = vsub.f32 %v597_v17, %v641_v20  ;;  %v2125_v36 = vpack.c.bf16 %v641_v20, %v638_v19  ;;  %v757_v17 = vand.u32 4294901760, %v2097_v14  ;;  %v765_v19 = vsub.f32 %v2099_v15, %v764_v60 }
  0x70   :  { %v786_v15 = vsub.f32 %v2119_v30, %v785_v32  ;;  %v2198_v30 = vpack.c.bf16 %v722_v54, %v715_v51 }
  0x71   :  { %1712 = vmatpush3.bf16.msra.mxu0 %v2084_v5  ;;  %v1771_v26 = vpack.c.bf16 %v2110_v23, %v2108_v22  ;;  %v758_v61 = vsub.f32 %v2097_v14, %v757_v17  ;;  %v766_v24 = vand.u32 4294901760, %v765_v19  ;;  %v778_v6 = vand.u32 4294901760, %v2110_v23 }
  0x72   :  { %1713 = vmatprep.subr.bf16.mxu0 %v1960_v0  ;;  %v792_v14 = vand.u32 4294901760, %v2122_v33  ;;  %v806_v22 = vand.u32 4294901760, %v2132_v39  ;;  %v2204_v2 = vpack.c.bf16 %v764_v60, %v757_v17 }
  0x73   :  { %1772 = vmatpush3.bf16.msra.mxu1 %v1771_v26  ;;  %v759_v20 = vand.u32 4294901760, %v758_v61  ;;  %v779_v27 = vsub.f32 %v2110_v23, %v778_v6  ;;  %v800_v23 = vsub.f32 %v2130_v38, %v799_v47  ;;  %v2206_v3 = vpack.c.bf16 %v778_v6, %v771_v25 }
  0x74   :  { %1773 = vmatprep.subr.bf16.mxu1 %v1960_v0  ;;  %v793_v35 = vsub.f32 %v2122_v33, %v792_v14  ;;  %v807_v49 = vsub.f32 %v2132_v39, %v806_v22  ;;  %v2200_v33 = vpack.c.bf16 %v736_v62, %v729_v46  ;;  %v2208_v4 = vpack.c.bf16 %v792_v14, %v785_v32  ;;  %v569_v14 = vld [vmem:[%s2303_s3 + $0x1] sm:$0x1] }
  0x75   :  { %1715 = vmatpush3.bf16.msra.mxu0 %v2095_v13  ;;  %v2178_v26 = vpack.c.bf16 %v766_v24, %v759_v20  ;;  %v780_v31 = vand.u32 4294901760, %v779_v27  ;;  %v801_v56 = vand.u32 4294901760, %v800_v23  ;;  %v2210_v38 = vpack.c.bf16 %v806_v22, %v799_v47  ;;  %v568_v27 = vld [vmem:[%s2303_s3] sm:$0x1] }
  0x76   :  { %1716 = vmatprep.subr.bf16.mxu0 %v1960_v0  ;;  %v808_v57 = vand.u32 4294901760, %v807_v49  ;;  %v575_v6 = vlaneseq }
  0x77   :  { %1775 = vmatpush3.bf16.msra.mxu1 %v1774_v37  ;;  %v2184_v34 = vpack.c.bf16 %v780_v31, %v773_v28  ;;  %v787_v37 = vand.u32 4294901760, %v786_v15 }
  0x78   :  { %1776 = vmatprep.subr.bf16.mxu1 %v1960_v0  ;;  %v2196_v58 = vpack.c.bf16 %v808_v57, %v801_v56  ;;  %v576_v7 = vshrl.u32 %v575_v6, 7 }
  0x79   :  { %1718 = vmatpush3.bf16.msra.mxu0 %v2106_v21 }
  0x7a   :  { %1719 = vmatprep.subr.bf16.mxu0 %v1960_v0  ;;  %v577_v28 = vsub.s32 0, %v576_v7 }
  0x7b   :  { %1778 = vmatpush3.bf16.msra.mxu1 %v1777_v40  ;;  %v794_v40 = vand.u32 4294901760, %v793_v35 }
  0x7c   :  { %1779 = vmatprep.subr.bf16.mxu1 %v1960_v0 }
  0x7d   :  { %1721 = vmatpush3.bf16.msra.mxu0 %v2117_v29  ;;  %v2190_v48 = vpack.c.bf16 %v794_v40, %v787_v37 }
  0x7e   :  { %1722 = vmatprep.subr.bf16.mxu0 %v1960_v0 }
  0x81   :  { %1724 = vmatpush3.bf16.msra.mxu0 %v2125_v36 }
  0x82   :  { %1725 = vmatprep.subr.bf16.mxu0 %v1960_v0 }
  0x85   :  { %1727 = vmatpush3.bf16.msra.mxu0 %v2138_v41 }
  0x86   :  { %1728 = vmatprep.subr.bf16.mxu0 %v1960_v0 }
  0x89   :  { %1730 = vmatpush3.bf16.msra.mxu0 %v2146_v44 }
  0x8a   :  { %1731 = vmatprep.subr.bf16.mxu0 %v1960_v0 }
 0x13f   :  { %v546_v39 = vpop.f32.mrb[0].mxu0 }
 0x140   :  { %v550_v42 = vmul.f32 %v546_v39, %v546_v39  ;;  %v551_v43 = vrot.slane %v546_v39, 4  ;;  %v1460_v8 = vpop.f32.mrb[1].mxu0 }
 0x142   :  { %v552_v53 = vadd.f32 %v551_v43, %v546_v39  ;;  %v557_v11 = vrot.slane %v550_v42, 4 }
 0x144   :  { %v553_v51 = vrot.slane %v552_v53, 2  ;;  %v558_v54 = vadd.f32 %v557_v11, %v550_v42 }
 0x146   :  { %v554_v46 = vadd.f32 %v553_v51, %v552_v53  ;;  %v559_v62 = vrot.slane %v558_v54, 2 }
 0x148   :  { %v555_v9 = vrot.slane %v554_v46, 1  ;;  %v560_v52 = vadd.f32 %v559_v62, %v558_v54 }
 0x14a   :  { %v556_v12 = vadd.f32 %v555_v9, %v554_v46  ;;  %v561_v16 = vrot.slane %v560_v52, 1 }
 0x14c   :  { %v562_v17 = vadd.f32 %v561_v16, %v560_v52  ;;  %v563_v60 = vmul.f32 0.125, %v556_v12 }
 0x14e   :  { %v564_v61 = vmul.f32 0.125, %v562_v17  ;;  %v565_v19 = vmul.f32 %v563_v60, %v563_v60 }
 0x150   :  { %v566_v20 = vsub.f32 %v564_v61, %v565_v19 }
 0x152   :  { %v567_v24 = vmax.f32 %v566_v20, 0.0 }
 0x154   :  { %v570_v25 = vadd.f32 1e-05, %v567_v24 }
 0x156   :  { %1879 = vrsqrt.f32 %v570_v25 }
 0x160   :  { %v1880_v31 = vpop.eup %1879 }
 0x161   :  { %v572_v32 = vmul.f32 %v1880_v31, %v568_v27 }
 0x163   :  { %v573_v15 = vmul.f32 %v572_v32, %v563_v60  ;;  %v578_v35 = vrot.slane %v572_v32, %v577_v28 }
 0x165   :  { %v574_v37 = vsub.f32 %v569_v14, %v573_v15  ;;  %v579_v40 = vmul.f32 %v578_v35, %v546_v39 }
 0x167   :  { %v583_v47 = vrot.slane %v574_v37, %v577_v28 }
 0x169   :  { %v584_v22 = vadd.f32 %v583_v47, %v579_v40 }
 0x16b   :  { %v585_v23 = vmax.f32 %v584_v22, 0.0 }
 0x16d   :  { %v2218_v49 = vand.u32 4294901760, %v585_v23 }
 0x16f   :  { %v689_v56 = vsub.f32 %v585_v23, %v2218_v49 }
 0x171   :  { %v690_v57 = vand.u32 4294901760, %v689_v56  ;;  %1564 = vmatmul.mubr.f32.vlgmr.msra.gmra.mrb[0].mxu1 %v689_v56 }
 0x172   :  { %1781 = vmatpush3.bf16.msra.mxu1 %v2073_v59  ;;  %1598 = vmatprep.mubr.msk.f32.mxu1 %vm1961_vm0, %v1962_v1 }
 0x173   :  { %1782 = vmatprep.subr.bf16.mxu1 %v1960_v0  ;;  %v691_v42 = vsub.f32 %v689_v56, %v690_v57 }
 0x175   :  { %v692_v43 = vand.u32 4294901760, %v691_v42 }
 0x176   :  { %1784 = vmatpush3.bf16.msra.mxu1 %v2084_v5 }
 0x177   :  { %1494 = vmatmul.mubr.f32.vlgmr.msra.gmra.mrb[2].mxu0 %v692_v43  ;;  %1785 = vmatprep.subr.bf16.mxu1 %v1960_v0 }
 0x178   :  { %1733 = vmatpush3.bf16.msra.mxu0 %v2154_v55  ;;  %1528 = vmatprep.mubr.msk.f32.mxu0 %vm1961_vm0, %v1962_v1 }
 0x179   :  { %1734 = vmatprep.subr.bf16.mxu0 %v1960_v0 }
 0x17a   :  { %1787 = vmatpush3.bf16.msra.mxu1 %v2095_v13 }
 0x17b   :  { %1788 = vmatprep.subr.bf16.mxu1 %v1960_v0 }
 0x17c   :  { %1736 = vmatpush3.bf16.msra.mxu0 %v2160_v63 }
 0x17d   :  { %1737 = vmatprep.subr.bf16.mxu0 %v1960_v0 }
 0x17e   :  { %1790 = vmatpush3.bf16.msra.mxu1 %v2106_v21 }
 0x17f   :  { %1791 = vmatprep.subr.bf16.mxu1 %v1960_v0 }
 0x180   :  { %1739 = vmatpush3.bf16.msra.mxu0 %v2166_v10 }
 0x181   :  { %1740 = vmatprep.subr.bf16.mxu0 %v1960_v0 }
 0x182   :  { %1793 = vmatpush3.bf16.msra.mxu1 %v2117_v29 }
 0x183   :  { %1794 = vmatprep.subr.bf16.mxu1 %v1960_v0 }
 0x184   :  { %1742 = vmatpush3.bf16.msra.mxu0 %v2172_v18 }
 0x185   :  { %1743 = vmatprep.subr.bf16.mxu0 %v1960_v0 }
 0x186   :  { %1796 = vmatpush3.bf16.msra.mxu1 %v2125_v36 }
 0x187   :  { %1797 = vmatprep.subr.bf16.mxu1 %v1960_v0 }
 0x188   :  { %1745 = vmatpush3.bf16.msra.mxu0 %v2178_v26 }
 0x189   :  { %1746 = vmatprep.subr.bf16.mxu0 %v1960_v0 }
 0x18a   :  { %1799 = vmatpush3.bf16.msra.mxu1 %v2138_v41 }
 0x18b   :  { %1800 = vmatprep.subr.bf16.mxu1 %v1960_v0 }
 0x18c   :  { %1748 = vmatpush3.bf16.msra.mxu0 %v2184_v34 }
 0x18d   :  { %1749 = vmatprep.subr.bf16.mxu0 %v1960_v0 }
 0x18e   :  { %1802 = vmatpush3.bf16.msra.mxu1 %v2146_v44 }
 0x18f   :  { %1803 = vmatprep.subr.bf16.mxu1 %v1960_v0 }
 0x190   :  { %1751 = vmatpush3.bf16.msra.mxu0 %v2190_v48 }
 0x191   :  { %1599 = vmatmul.mubr.f32.vlgmr.msra.gmra.mrb[0].mxu1 %v690_v57  ;;  %1752 = vmatprep.subr.bf16.mxu0 %v1960_v0 }
 0x192   :  { %1805 = vmatpush3.bf16.msra.mxu1 %v2194_v50  ;;  %1633 = vmatprep.mubr.msk.f32.mxu1 %vm1961_vm0, %v1962_v1 }
 0x193   :  { %1806 = vmatprep.subr.bf16.mxu1 %v1960_v0 }
 0x194   :  { %1754 = vmatpush3.bf16.msra.mxu0 %v2196_v58 }
 0x196   :  { %1808 = vmatpush3.bf16.msra.mxu1 %v2198_v30 }
 0x197   :  { %1529 = vmatmul.mubr.f32.vlgmr.msra.gmra.mrb[2].mxu0 %v2218_v49  ;;  %1809 = vmatprep.subr.bf16.mxu1 %v1960_v0 }
 0x19a   :  { %1811 = vmatpush3.bf16.msra.mxu1 %v2200_v33 }
 0x19b   :  { %1812 = vmatprep.subr.bf16.mxu1 %v1960_v0 }
 0x19e   :  { %1814 = vmatpush3.bf16.msra.mxu1 %v2202_v45 }
 0x19f   :  { %1815 = vmatprep.subr.bf16.mxu1 %v1960_v0 }
 0x1a2   :  { %1817 = vmatpush3.bf16.msra.mxu1 %v2204_v2 }
 0x1a3   :  { %1818 = vmatprep.subr.bf16.mxu1 %v1960_v0 }
 0x1a6   :  { %1820 = vmatpush3.bf16.msra.mxu1 %v2206_v3 }
 0x1a7   :  { %1821 = vmatprep.subr.bf16.mxu1 %v1960_v0 }
 0x1aa   :  { %1823 = vmatpush3.bf16.msra.mxu1 %v2208_v4 }
 0x1ab   :  { %1824 = vmatprep.subr.bf16.mxu1 %v1960_v0 }
 0x1ae   :  { %1826 = vmatpush3.bf16.msra.mxu1 %v2210_v38 }
 0x1af   :  { %1827 = vmatprep.subr.bf16.mxu1 %v1960_v0 }
 0x1b1   :  { %1634 = vmatmul.mubr.f32.vlgmr.msra.gmra.mrb[0].mxu1 %v2218_v49 }
 0x1b2   :  { %1829 = vmatpush3.bf16.msra.mxu1 %v2073_v59  ;;  %1668 = vmatprep.mubr.msk.f32.mxu1 %vm1961_vm0, %v1962_v1 }
 0x1b3   :  { %1830 = vmatprep.subr.bf16.mxu1 %v1960_v0 }
 0x1b6   :  { %1832 = vmatpush3.bf16.msra.mxu1 %v2084_v5  ;;  %v1262_v5 = vld [vmem:[%s2303_s3 + $0x2] ss:$0 sm:$0xff] }
 0x1b7   :  { %1833 = vmatprep.subr.bf16.mxu1 %v1960_v0 }
 0x1ba   :  { %1835 = vmatpush3.bf16.msra.mxu1 %v2095_v13 }
 0x1bb   :  { %1836 = vmatprep.subr.bf16.mxu1 %v1960_v0 }
 0x1be   :  { %1838 = vmatpush3.bf16.msra.mxu1 %v2106_v21 }
 0x1bf   :  { %1839 = vmatprep.subr.bf16.mxu1 %v1960_v0 }
 0x1c2   :  { %1841 = vmatpush3.bf16.msra.mxu1 %v2117_v29 }
 0x1c3   :  { %1842 = vmatprep.subr.bf16.mxu1 %v1960_v0 }
 0x1c6   :  { %1844 = vmatpush3.bf16.msra.mxu1 %v2125_v36 }
 0x1c7   :  { %1845 = vmatprep.subr.bf16.mxu1 %v1960_v0 }
 0x1ca   :  { %1847 = vmatpush3.bf16.msra.mxu1 %v2138_v41 }
 0x1cb   :  { %1848 = vmatprep.subr.bf16.mxu1 %v1960_v0 }
 0x1ce   :  { %1850 = vmatpush3.bf16.msra.mxu1 %v2146_v44 }
 0x1d1   :  { %1669 = vmatmul.mubr.f32.vlgmr.msra.gmra.mrb[0].mxu1 %v2218_v49 }
 0x26a   :  { %v845_v1 = vpop.f32.mrb[2].mxu0 }
 0x26b   :  { %v1530_v59 = vpop.f32.mrb[3].mxu0  ;;  %v1851_v13 = vadd.f32 %v1262_v5, %v845_v1 }
 0x2a4   :  { %v1244_v21 = vpop.f32.mrb[0].mxu1 }
 0x2a5   :  { %v1852_v29 = vadd.f32 %v1851_v13, %v1244_v21  ;;  %v1670_v36 = vpop.f32.mrb[1].mxu1 }
 0x2a7   :  { %1881 = vtanh.f32 %v1852_v29 }
 0x2b1   :  { %v1882_v55 = vpop.eup %1881 }
 0x2b2   :  { %v1249_v63 = vmul.f32 %v1882_v55, %v1882_v55 }
 0x2b4   :  { %1250 = vadd.xlane.f32.xlu0 %v1249_v63 }
 0x341   :  { %v1251_v41 = vpop.xlane.xlu0 %1250 }
 0x342   :  { %v1252_v0 = vmax.f32 %v1251_v41, 1e-24 }
 0x344   :  { %1883 = vrsqrt.f32 %v1252_v0 }
 0x34e   :  { %v1884_v44 = vpop.eup %1883 }
 0x34f   :  { %v1254_v10 = vmul.f32 %v1884_v44, %v1882_v55 }
 0x351   :  { %1255 = vst [vmem:[%s2304_s4] sm:$0xff] %v1254_v10 }
 0x352   :  { %1260 = vsyncpa [#allocation3], 1 }
 0x353   :  { %1261 = vsyncpa [#allocation5], 1 }

</bundles_post_ra>
